<compile_context>
chip_gen: v5e
topology: v5e:2x2
jax: 0.10.0
libtpu: 0.0.40
codegen_flags: <defaults>
</compile_context>

<pallas_src>
import functools
import math

import jax
import jax.numpy as jnp
from jax.experimental import pallas as pl
from jax.experimental.pallas import tpu as pltpu

# ----------------------------- model config ---------------------------------
BATCH = 2
SEQ = 8            # <= 512 -> simple branch of encode_sequence
HIDDEN = 64
NUM_HEADS = 2
HEAD_DIM = HIDDEN // NUM_HEADS
FFN_DIM = 128
NUM_LAYERS = 2
VOCAB = 120
MAX_POS = SEQ + 4
LN_EPS = 1e-5


# ----------------------------- helpers (in-kernel) ---------------------------
def _ln(x, gamma, beta):
    """LayerNorm over the last (hidden) axis; gamma/beta are [1, H] f32."""
    mean = jnp.mean(x, axis=-1, keepdims=True)
    cx = x - mean
    var = jnp.mean(cx * cx, axis=-1, keepdims=True)
    return cx * jax.lax.rsqrt(var + LN_EPS) * gamma + beta


# ----------------------------- fused encoder kernel --------------------------
def _make_encoder_kernel(num_heads, head_dim, emit_probs):
    hidden = num_heads * head_dim

    def kernel(x0_ref, mask_ref,
               wqkv_ref, bqkv_ref, wo_ref, bo_ref, ln1_g_ref, ln1_b_ref,
               w1_ref, b1_ref, w2_ref, b2_ref, ln2_g_ref, ln2_b_ref,
               hid_ref, *rest):
        if emit_probs:
            probs_ref, x_scr, ctx_scr = rest
        else:
            probs_ref = None
            x_scr, ctx_scr = rest

        layer = pl.program_id(1)

        # Layer 0 of this batch row: seed the residual stream from the
        # embedding(+LN) activations. It then stays resident in VMEM across
        # the whole layer axis (no HBM round-trips between layers).
        @pl.when(layer == 0)
        def _():
            x_scr[...] = x0_ref[0]

        x = x_scr[...]                              # [S, H] f32 residual stream
        x_bf = x.astype(jnp.bfloat16)
        bias = mask_ref[0]                          # [1, S] additive key bias

        # ---- fused QKV projection (bf16 operands, f32 accumulation) ----
        # (the 1/sqrt(head_dim) score scale is folded into wq at init time)
        qkv = jnp.dot(x_bf, wqkv_ref[0],
                      preferred_element_type=jnp.float32) + bqkv_ref[0]
        q = qkv[:, :hidden]
        k = qkv[:, hidden:2 * hidden]
        v = qkv[:, 2 * hidden:3 * hidden]

        # ---- per-head attention; head contexts written straight into VMEM ----
        for h in range(num_heads):
            c0 = h * head_dim
            qh = q[:, c0:c0 + head_dim].astype(jnp.bfloat16)
            kh = k[:, c0:c0 + head_dim].astype(jnp.bfloat16)
            vh = v[:, c0:c0 + head_dim].astype(jnp.bfloat16)
            # contract the head dim of both operands -> no explicit transpose
            s = jax.lax.dot_general(qh, kh, (((1,), (1,)), ((), ())),
                                    preferred_element_type=jnp.float32) + bias
            s = s - jnp.max(s, axis=-1, keepdims=True)
            e = jnp.exp(s)
            p = e / jnp.sum(e, axis=-1, keepdims=True)   # exact: user-visible
            if emit_probs:
                probs_ref[0, h] = p.astype(probs_ref.dtype)
            ctx_scr[:, c0:c0 + head_dim] = jnp.dot(
                p.astype(jnp.bfloat16), vh, preferred_element_type=jnp.float32)

        # ---- attention output projection + residual LayerNorm (f32) ----
        attn = jnp.dot(ctx_scr[...].astype(jnp.bfloat16), wo_ref[0],
                       preferred_element_type=jnp.float32) + bo_ref[0]
        x1 = _ln(attn + x, ln1_g_ref[0], ln1_b_ref[0])

        # ---- FFN (intermediate never leaves VMEM) + residual LayerNorm ----
        h1 = jnp.dot(x1.astype(jnp.bfloat16), w1_ref[0],
                     preferred_element_type=jnp.float32) + b1_ref[0]
        # TODO(synk): HF RoBERTa uses exact (erf) GELU; tanh approximation here.
        h1 = jax.nn.gelu(h1, approximate=True)
        h2 = jnp.dot(h1.astype(jnp.bfloat16), w2_ref[0],
                     preferred_element_type=jnp.float32) + b2_ref[0]
        y = _ln(h2 + x1, ln2_g_ref[0], ln2_b_ref[0])

        x_scr[...] = y                              # carry residual to layer l+1
        hid_ref[0, 0] = y.astype(hid_ref.dtype)     # per-layer hidden state out

    return kernel


def roberta_encoder(x0, mask_bias, params, output_attentions=True):
    """x0: [B, S, H] f32 (embedding + LN); mask_bias: [B, 1, S] f32 additive.

    Single pallas_call over grid=(BATCH, NUM_LAYERS):
      batch axis "parallel" (megacore / v7x second TC),
      layer axis "arbitrary" with the residual stream in persistent VMEM and
      stacked weights auto-prefetched one layer ahead by the pipeline.
    Returns (hiddens [L, B, S, H], probs [L, B*NH, S, S] or None).
    """
    B, S, H = x0.shape
    L = NUM_LAYERS

    def wspec(shape):   # stacked per-layer weights: pick layer l, full otherwise
        nd = len(shape)
        return pl.BlockSpec((1,) + shape[1:],
                            lambda b, l, _nd=nd: (l,) + (0,) * (_nd - 1))

    in_specs = [
        pl.BlockSpec((1, S, H), lambda b, l: (b, 0, 0)),     # x0 (per-batch row)
        pl.BlockSpec((1, 1, S), lambda b, l: (b, 0, 0)),     # mask bias
        wspec((L, H, 3 * H)),      # wqkv (bf16)
        wspec((L, 1, 3 * H)),      # bqkv
        wspec((L, H, H)),          # wo   (bf16)
        wspec((L, 1, H)),          # bo
        wspec((L, 1, H)),          # ln1_g
        wspec((L, 1, H)),          # ln1_b
        wspec((L, H, FFN_DIM)),    # w1   (bf16)
        wspec((L, 1, FFN_DIM)),    # b1
        wspec((L, FFN_DIM, H)),    # w2   (bf16)
        wspec((L, 1, H)),          # b2
        wspec((L, 1, H)),          # ln2_g
        wspec((L, 1, H)),          # ln2_b
    ]
    out_shape = [jax.ShapeDtypeStruct((L, B, S, H), jnp.float32)]
    out_specs = [pl.BlockSpec((1, 1, S, H), lambda b, l: (l, b, 0, 0))]
    if output_attentions:
        out_shape.append(
            jax.ShapeDtypeStruct((L, B * NUM_HEADS, S, S), jnp.float32))
        out_specs.append(
            pl.BlockSpec((1, NUM_HEADS, S, S), lambda b, l: (l, b, 0, 0)))

    kernel = _make_encoder_kernel(NUM_HEADS, HEAD_DIM, output_attentions)

    results = pl.pallas_call(
        kernel,
        out_shape=tuple(out_shape),
        grid=(B, L),
        in_specs=in_specs,
        out_specs=tuple(out_specs),
        scratch_shapes=[
            pltpu.VMEM((S, H), jnp.float32),   # residual stream x (persistent)
            pltpu.VMEM((S, H), jnp.float32),   # per-head attention context
        ],
        compiler_params=pltpu.CompilerParams(
            dimension_semantics=("parallel", "arbitrary")),
    )(x0, mask_bias,
      params["wqkv"], params["bqkv"], params["wo"], params["bo"],
      params["ln1_g"], params["ln1_b"],
      params["w1"], params["b1"], params["w2"], params["b2"],
      params["ln2_g"], params["ln2_b"])

    if output_attentions:
        hiddens, probs = results
    else:
        hiddens = results[0] if isinstance(results, (tuple, list)) else results
        probs = None
    return hiddens, probs


# --------------------------- parameter creation ------------------------------
def init_params(key):
    def nrm(k, shape, std=0.02):
        return std * jax.random.normal(k, shape, dtype=jnp.float32)

    ks = iter(jax.random.split(key, 16))

    wqkv = nrm(next(ks), (NUM_LAYERS, HIDDEN, 3 * HIDDEN))
    # Fold the 1/sqrt(head_dim) attention scale into the query projection
    # (bq is zero here; with a nonzero bq its first-H slice must be scaled too).
    wqkv = wqkv.at[:, :, :HIDDEN].multiply(1.0 / math.sqrt(HEAD_DIM))

    params = {
        "word_emb": nrm(next(ks), (VOCAB, HIDDEN)),
        "pos_emb": nrm(next(ks), (MAX_POS, HIDDEN)),
        "type_emb": nrm(next(ks), (2, HIDDEN)),
        "emb_ln_g": jnp.ones((HIDDEN,), jnp.float32),
        "emb_ln_b": jnp.zeros((HIDDEN,), jnp.float32),
        "pool_w": nrm(next(ks), (HIDDEN, HIDDEN)),
        "pool_b": jnp.zeros((HIDDEN,), jnp.float32),
        # stacked per-layer encoder weights; MXU operands stored in bf16
        "wqkv": wqkv.astype(jnp.bfloat16),
        "bqkv": jnp.zeros((NUM_LAYERS, 1, 3 * HIDDEN), jnp.float32),
        "wo": nrm(next(ks), (NUM_LAYERS, HIDDEN, HIDDEN)).astype(jnp.bfloat16),
        "bo": jnp.zeros((NUM_LAYERS, 1, HIDDEN), jnp.float32),
        "ln1_g": jnp.ones((NUM_LAYERS, 1, HIDDEN), jnp.float32),
        "ln1_b": jnp.zeros((NUM_LAYERS, 1, HIDDEN), jnp.float32),
        "w1": nrm(next(ks), (NUM_LAYERS, HIDDEN, FFN_DIM)).astype(jnp.bfloat16),
        "b1": jnp.zeros((NUM_LAYERS, 1, FFN_DIM), jnp.float32),
        "w2": nrm(next(ks), (NUM_LAYERS, FFN_DIM, HIDDEN)).astype(jnp.bfloat16),
        "b2": jnp.zeros((NUM_LAYERS, 1, HIDDEN), jnp.float32),
        "ln2_g": jnp.ones((NUM_LAYERS, 1, HIDDEN), jnp.float32),
        "ln2_b": jnp.zeros((NUM_LAYERS, 1, HIDDEN), jnp.float32),
    }
    return params


# ------------------------------ forward pass ---------------------------------
def pretrained_model_forward(params, input_ids, attention_mask,
                             output_attentions=True):
    """Mirrors PretrainedModel.forward (c <= 512 branch of encode_sequence):
    returns (sequence_output, pooled_output, hidden_states, attentions)."""
    B, S = input_ids.shape

    # Embeddings (gathers) + embedding LayerNorm in plain JAX; XLA fuses the LN
    # with the gathers, so no standalone pallas_call for this tiny op.
    mask_i = attention_mask.astype(jnp.int32)
    pos_ids = jnp.cumsum(mask_i, axis=1) * mask_i + 1   # RoBERTa padding_idx=1
    emb = (params["word_emb"][input_ids]
           + params["pos_emb"][pos_ids]
           + params["type_emb"][0][None, None, :])       # [B, S, H] f32
    mean = jnp.mean(emb, axis=-1, keepdims=True)
    cemb = emb - mean
    var = jnp.mean(cemb * cemb, axis=-1, keepdims=True)
    x0 = (cemb * jax.lax.rsqrt(var + LN_EPS)
          * params["emb_ln_g"] + params["emb_ln_b"])     # [B, S, H] f32

    # additive attention-mask bias, broadcast over query rows inside the kernel
    mask_bias = ((1.0 - attention_mask.astype(jnp.float32)) * -1e4)[:, None, :]

    hiddens, probs = roberta_encoder(x0, mask_bias, params, output_attentions)

    sequence_output = hiddens[-1]                                   # [B, S, H]
    hidden_states = (x0,) + tuple(hiddens[i] for i in range(NUM_LAYERS))
    if output_attentions:
        probs = probs.reshape(NUM_LAYERS, B, NUM_HEADS, S, S)
        attentions = tuple(probs[i] for i in range(NUM_LAYERS))
    else:
        attentions = None

    # Pooler: tanh(W * h[:, 0] + b) in plain JAX — a (2,64)x(64,64) matmul is
    # dwarfed by a pallas_call launch (per perf review).
    pooled_output = jnp.tanh(
        sequence_output[:, 0, :] @ params["pool_w"] + params["pool_b"])

    # Same tuple structure as RobertaModel(output_hidden_states, output_attentions)
    return (sequence_output, pooled_output, hidden_states, attentions)


# ----------------------------------- main ------------------------------------
if __name__ == "__main__":
    key = jax.random.PRNGKey(0)
    pkey, ikey = jax.random.split(key)
    params = init_params(pkey)

    input_ids = jax.random.randint(ikey, (BATCH, SEQ), 3, VOCAB, dtype=jnp.int32)
    attention_mask = jnp.ones((BATCH, SEQ), dtype=jnp.int32)

    # TODO(synk): the c > 512 segmentation/re-merging branch of encode_sequence
    # is data-dependent Python control flow and is not implemented here.
    fwd = jax.jit(functools.partial(pretrained_model_forward, params))
    seq_out, pooled, hiddens, attns = fwd(input_ids, attention_mask)
    jax.block_until_ready((seq_out, pooled, hiddens, attns))

    assert seq_out.shape == (BATCH, SEQ, HIDDEN)
    assert pooled.shape == (BATCH, HIDDEN)
    assert len(hiddens) == NUM_LAYERS + 1
    assert len(attns) == NUM_LAYERS
    assert attns[0].shape == (BATCH, NUM_HEADS, SEQ, SEQ)
    print("KERNEL_OK")
</pallas_src>

<mosaic_0001>
module attributes {stable_mosaic.version = 11 : i64} {
  func.func @kernel(%arg0: i32, %arg1: i32, %arg2: memref<1x8x64xf32, #tpu.memory_space<vmem>>, %arg3: memref<1x1x8xf32, #tpu.memory_space<vmem>>, %arg4: memref<1x64x192xbf16, #tpu.memory_space<vmem>>, %arg5: memref<1x1x192xf32, #tpu.memory_space<vmem>>, %arg6: memref<1x64x64xbf16, #tpu.memory_space<vmem>>, %arg7: memref<1x1x64xf32, #tpu.memory_space<vmem>>, %arg8: memref<1x1x64xf32, #tpu.memory_space<vmem>>, %arg9: memref<1x1x64xf32, #tpu.memory_space<vmem>>, %arg10: memref<1x64x128xbf16, #tpu.memory_space<vmem>>, %arg11: memref<1x1x128xf32, #tpu.memory_space<vmem>>, %arg12: memref<1x128x64xbf16, #tpu.memory_space<vmem>>, %arg13: memref<1x1x64xf32, #tpu.memory_space<vmem>>, %arg14: memref<1x1x64xf32, #tpu.memory_space<vmem>>, %arg15: memref<1x1x64xf32, #tpu.memory_space<vmem>>, %arg16: memref<1x1x8x64xf32, #tpu.memory_space<vmem>>, %arg17: memref<1x2x8x8xf32, #tpu.memory_space<vmem>>, %arg18: memref<8x64xf32, #tpu.memory_space<vmem>>, %arg19: memref<8x64xf32, #tpu.memory_space<vmem>>) attributes {dimension_semantics = [#tpu.dimension_semantics<parallel>, #tpu.dimension_semantics<arbitrary>], iteration_bounds = array<i64: 2, 2>, scalar_prefetch = 0 : i64, scratch_operands = 2 : i64, tpu.core_type = #tpu.core_type<tc>, window_params = [{transform_indices = @transform_0, window_bounds = array<i64: 1, 8, 64>}, {transform_indices = @transform_1, window_bounds = array<i64: 1, 1, 8>}, {transform_indices = @transform_2, window_bounds = array<i64: 1, 64, 192>}, {transform_indices = @transform_3, window_bounds = array<i64: 1, 1, 192>}, {transform_indices = @transform_4, window_bounds = array<i64: 1, 64, 64>}, {transform_indices = @transform_5, window_bounds = array<i64: 1, 1, 64>}, {transform_indices = @transform_6, window_bounds = array<i64: 1, 1, 64>}, {transform_indices = @transform_7, window_bounds = array<i64: 1, 1, 64>}, {transform_indices = @transform_8, window_bounds = array<i64: 1, 64, 128>}, {transform_indices = @transform_9, window_bounds = array<i64: 1, 1, 128>}, {transform_indices = @transform_10, window_bounds = array<i64: 1, 128, 64>}, {transform_indices = @transform_11, window_bounds = array<i64: 1, 1, 64>}, {transform_indices = @transform_12, window_bounds = array<i64: 1, 1, 64>}, {transform_indices = @transform_13, window_bounds = array<i64: 1, 1, 64>}, {transform_indices = @transform_14, window_bounds = array<i64: 1, 1, 8, 64>}, {transform_indices = @transform_15, window_bounds = array<i64: 1, 2, 8, 8>}]} {
    %c0_i32 = arith.constant 0 : i32
    %0 = arith.cmpi eq, %arg1, %c0_i32 : i32
    %1 = arith.extui %0 : i1 to i32
    %c0_i32_0 = arith.constant 0 : i32
    %2 = arith.cmpi ne, %1, %c0_i32_0 : i32
    scf.if %2 {
      %c0_84 = arith.constant 0 : index
      %c0_85 = arith.constant 0 : index
      %c0_86 = arith.constant 0 : index
      %157 = vector.load %arg2[%c0_84, %c0_85, %c0_86] : memref<1x8x64xf32, #tpu.memory_space<vmem>>, vector<1x8x64xf32>
      %158 = vector.shape_cast %157 : vector<1x8x64xf32> to vector<8x64xf32>
      %c0_87 = arith.constant 0 : index
      %c0_88 = arith.constant 0 : index
      %159 = vector.load %arg18[%c0_87, %c0_88] : memref<8x64xf32, #tpu.memory_space<vmem>>, vector<8x64xf32>
      tpu.vector_store %arg18[%c0_87, %c0_88], %158 {strides = array<i32>} : memref<8x64xf32, #tpu.memory_space<vmem>>, vector<8x64xf32>,
    } else {
    }
    %c0 = arith.constant 0 : index
    %c0_1 = arith.constant 0 : index
    %3 = vector.load %arg18[%c0, %c0_1] : memref<8x64xf32, #tpu.memory_space<vmem>>, vector<8x64xf32>
    %4 = arith.truncf %3 : vector<8x64xf32> to vector<8x64xbf16>
    %c0_2 = arith.constant 0 : index
    %c0_3 = arith.constant 0 : index
    %c0_4 = arith.constant 0 : index
    %5 = vector.load %arg3[%c0_2, %c0_3, %c0_4] : memref<1x1x8xf32, #tpu.memory_space<vmem>>, vector<1x1x8xf32>
    %6 = vector.shape_cast %5 : vector<1x1x8xf32> to vector<1x8xf32>
    %c0_5 = arith.constant 0 : index
    %c0_6 = arith.constant 0 : index
    %c0_7 = arith.constant 0 : index
    %7 = vector.load %arg4[%c0_5, %c0_6, %c0_7] : memref<1x64x192xbf16, #tpu.memory_space<vmem>>, vector<1x64x192xbf16>
    %8 = vector.shape_cast %7 : vector<1x64x192xbf16> to vector<64x192xbf16>
    %cst = arith.constant dense<0.000000e+00> : vector<8x192xf32>
    %9 = tpu.matmul %4, %8, %cst {dimension_numbers = #tpu.dot_dimension_numbers<[1], [0], [0], [1], [0, 0, 1, 1], [], []>} : vector<8x64xbf16>, vector<64x192xbf16>, vector<8x192xf32> -> vector<8x192xf32>
    %c0_8 = arith.constant 0 : index
    %c0_9 = arith.constant 0 : index
    %c0_10 = arith.constant 0 : index
    %10 = vector.load %arg5[%c0_8, %c0_9, %c0_10] : memref<1x1x192xf32, #tpu.memory_space<vmem>>, vector<1x1x192xf32>
    %11 = vector.shape_cast %10 : vector<1x1x192xf32> to vector<1x192xf32>
    %12 = vector.broadcast %11 : vector<1x192xf32> to vector<8x192xf32>
    %13 = arith.addf %9, %12 : vector<8x192xf32>
    %14 = vector.extract_strided_slice %13 {offsets = [0, 0], sizes = [8, 64], strides = [1, 1]} : vector<8x192xf32> to vector<8x64xf32>
    %15 = vector.extract_strided_slice %13 {offsets = [0, 64], sizes = [8, 64], strides = [1, 1]} : vector<8x192xf32> to vector<8x64xf32>
    %16 = vector.extract_strided_slice %13 {offsets = [0, 128], sizes = [8, 64], strides = [1, 1]} : vector<8x192xf32> to vector<8x64xf32>
    %17 = vector.extract_strided_slice %14 {offsets = [0, 0], sizes = [8, 32], strides = [1, 1]} : vector<8x64xf32> to vector<8x32xf32>
    %18 = arith.truncf %17 : vector<8x32xf32> to vector<8x32xbf16>
    %19 = vector.extract_strided_slice %15 {offsets = [0, 0], sizes = [8, 32], strides = [1, 1]} : vector<8x64xf32> to vector<8x32xf32>
    %20 = arith.truncf %19 : vector<8x32xf32> to vector<8x32xbf16>
    %21 = vector.extract_strided_slice %16 {offsets = [0, 0], sizes = [8, 32], strides = [1, 1]} : vector<8x64xf32> to vector<8x32xf32>
    %22 = arith.truncf %21 : vector<8x32xf32> to vector<8x32xbf16>
    %cst_11 = arith.constant dense<0.000000e+00> : vector<8x8xf32>
    %23 = tpu.matmul %18, %20, %cst_11 {dimension_numbers = #tpu.dot_dimension_numbers<[1], [1], [0], [0], [0, 0, 1, 0], [], []>} : vector<8x32xbf16>, vector<8x32xbf16>, vector<8x8xf32> -> vector<8x8xf32>
    %24 = vector.broadcast %6 : vector<1x8xf32> to vector<8x8xf32>
    %25 = arith.addf %23, %24 : vector<8x8xf32>
    %cst_12 = arith.constant dense<0xFF800000> : vector<8xf32>
    %26 = vector.multi_reduction <maximumf>, %25, %cst_12 [1] : vector<8x8xf32> to vector<8xf32>
    %27 = vector.shape_cast %26 : vector<8xf32> to vector<8x1xf32>
    %28 = vector.broadcast %27 : vector<8x1xf32> to vector<8x8xf32>
    %29 = arith.subf %25, %28 : vector<8x8xf32>
    %30 = math.exp %29 : vector<8x8xf32>
    %cst_13 = arith.constant dense<0.000000e+00> : vector<8xf32>
    %31 = vector.multi_reduction <add>, %30, %cst_13 [1] : vector<8x8xf32> to vector<8xf32>
    %32 = vector.shape_cast %31 : vector<8xf32> to vector<8x1xf32>
    %33 = vector.broadcast %32 : vector<8x1xf32> to vector<8x8xf32>
    %34 = arith.divf %30, %33 : vector<8x8xf32>
    %c0_14 = arith.constant 0 : index
    %c0_15 = arith.constant 0 : index
    %c0_16 = arith.constant 0 : index
    %c0_17 = arith.constant 0 : index
    %35 = vector.load %arg17[%c0_14, %c0_15, %c0_16, %c0_17] : memref<1x2x8x8xf32, #tpu.memory_space<vmem>>, vector<1x1x8x8xf32>
    %36 = vector.shape_cast %35 : vector<1x1x8x8xf32> to vector<8x8xf32>
    %37 = vector.shape_cast %34 : vector<8x8xf32> to vector<1x1x8x8xf32>
    tpu.vector_store %arg17[%c0_14, %c0_15, %c0_16, %c0_17], %37 {strides = array<i32>} : memref<1x2x8x8xf32, #tpu.memory_space<vmem>>, vector<1x1x8x8xf32>,
    %38 = arith.truncf %34 : vector<8x8xf32> to vector<8x8xbf16>
    %cst_18 = arith.constant dense<0.000000e+00> : vector<8x32xf32>
    %39 = tpu.matmul %38, %22, %cst_18 {dimension_numbers = #tpu.dot_dimension_numbers<[1], [0], [0], [1], [0, 0, 1, 1], [], []>} : vector<8x8xbf16>, vector<8x32xbf16>, vector<8x32xf32> -> vector<8x32xf32>
    %c0_19 = arith.constant 0 : index
    %c0_20 = arith.constant 0 : index
    %40 = vector.load %arg19[%c0_19, %c0_20] : memref<8x64xf32, #tpu.memory_space<vmem>>, vector<8x32xf32>
    tpu.vector_store %arg19[%c0_19, %c0_20], %39 {strides = array<i32>} : memref<8x64xf32, #tpu.memory_space<vmem>>, vector<8x32xf32>,
    %41 = vector.extract_strided_slice %14 {offsets = [0, 32], sizes = [8, 32], strides = [1, 1]} : vector<8x64xf32> to vector<8x32xf32>
    %42 = arith.truncf %41 : vector<8x32xf32> to vector<8x32xbf16>
    %43 = vector.extract_strided_slice %15 {offsets = [0, 32], sizes = [8, 32], strides = [1, 1]} : vector<8x64xf32> to vector<8x32xf32>
    %44 = arith.truncf %43 : vector<8x32xf32> to vector<8x32xbf16>
    %45 = vector.extract_strided_slice %16 {offsets = [0, 32], sizes = [8, 32], strides = [1, 1]} : vector<8x64xf32> to vector<8x32xf32>
    %46 = arith.truncf %45 : vector<8x32xf32> to vector<8x32xbf16>
    %cst_21 = arith.constant dense<0.000000e+00> : vector<8x8xf32>
    %47 = tpu.matmul %42, %44, %cst_21 {dimension_numbers = #tpu.dot_dimension_numbers<[1], [1], [0], [0], [0, 0, 1, 0], [], []>} : vector<8x32xbf16>, vector<8x32xbf16>, vector<8x8xf32> -> vector<8x8xf32>
    %48 = vector.broadcast %6 : vector<1x8xf32> to vector<8x8xf32>
    %49 = arith.addf %47, %48 : vector<8x8xf32>
    %cst_22 = arith.constant dense<0xFF800000> : vector<8xf32>
    %50 = vector.multi_reduction <maximumf>, %49, %cst_22 [1] : vector<8x8xf32> to vector<8xf32>
    %51 = vector.shape_cast %50 : vector<8xf32> to vector<8x1xf32>
    %52 = vector.broadcast %51 : vector<8x1xf32> to vector<8x8xf32>
    %53 = arith.subf %49, %52 : vector<8x8xf32>
    %54 = math.exp %53 : vector<8x8xf32>
    %cst_23 = arith.constant dense<0.000000e+00> : vector<8xf32>
    %55 = vector.multi_reduction <add>, %54, %cst_23 [1] : vector<8x8xf32> to vector<8xf32>
    %56 = vector.shape_cast %55 : vector<8xf32> to vector<8x1xf32>
    %57 = vector.broadcast %56 : vector<8x1xf32> to vector<8x8xf32>
    %58 = arith.divf %54, %57 : vector<8x8xf32>
    %c0_24 = arith.constant 0 : index
    %c1 = arith.constant 1 : index
    %c0_25 = arith.constant 0 : index
    %c0_26 = arith.constant 0 : index
    %59 = vector.load %arg17[%c0_24, %c1, %c0_25, %c0_26] : memref<1x2x8x8xf32, #tpu.memory_space<vmem>>, vector<1x1x8x8xf32>
    %60 = vector.shape_cast %59 : vector<1x1x8x8xf32> to vector<8x8xf32>
    %61 = vector.shape_cast %58 : vector<8x8xf32> to vector<1x1x8x8xf32>
    tpu.vector_store %arg17[%c0_24, %c1, %c0_25, %c0_26], %61 {strides = array<i32>} : memref<1x2x8x8xf32, #tpu.memory_space<vmem>>, vector<1x1x8x8xf32>,
    %62 = arith.truncf %58 : vector<8x8xf32> to vector<8x8xbf16>
    %cst_27 = arith.constant dense<0.000000e+00> : vector<8x32xf32>
    %63 = tpu.matmul %62, %46, %cst_27 {dimension_numbers = #tpu.dot_dimension_numbers<[1], [0], [0], [1], [0, 0, 1, 1], [], []>} : vector<8x8xbf16>, vector<8x32xbf16>, vector<8x32xf32> -> vector<8x32xf32>
    %c0_28 = arith.constant 0 : index
    %c32 = arith.constant 32 : index
    %64 = vector.load %arg19[%c0_28, %c32] : memref<8x64xf32, #tpu.memory_space<vmem>>, vector<8x32xf32>
    tpu.vector_store %arg19[%c0_28, %c32], %63 {strides = array<i32>} : memref<8x64xf32, #tpu.memory_space<vmem>>, vector<8x32xf32>,
    %c0_29 = arith.constant 0 : index
    %c0_30 = arith.constant 0 : index
    %65 = vector.load %arg19[%c0_29, %c0_30] : memref<8x64xf32, #tpu.memory_space<vmem>>, vector<8x64xf32>
    %66 = arith.truncf %65 : vector<8x64xf32> to vector<8x64xbf16>
    %c0_31 = arith.constant 0 : index
    %c0_32 = arith.constant 0 : index
    %c0_33 = arith.constant 0 : index
    %67 = vector.load %arg6[%c0_31, %c0_32, %c0_33] : memref<1x64x64xbf16, #tpu.memory_space<vmem>>, vector<1x64x64xbf16>
    %68 = vector.shape_cast %67 : vector<1x64x64xbf16> to vector<64x64xbf16>
    %cst_34 = arith.constant dense<0.000000e+00> : vector<8x64xf32>
    %69 = tpu.matmul %66, %68, %cst_34 {dimension_numbers = #tpu.dot_dimension_numbers<[1], [0], [0], [1], [0, 0, 1, 1], [], []>} : vector<8x64xbf16>, vector<64x64xbf16>, vector<8x64xf32> -> vector<8x64xf32>
    %c0_35 = arith.constant 0 : index
    %c0_36 = arith.constant 0 : index
    %c0_37 = arith.constant 0 : index
    %70 = vector.load %arg7[%c0_35, %c0_36, %c0_37] : memref<1x1x64xf32, #tpu.memory_space<vmem>>, vector<1x1x64xf32>
    %71 = vector.shape_cast %70 : vector<1x1x64xf32> to vector<1x64xf32>
    %72 = vector.broadcast %71 : vector<1x64xf32> to vector<8x64xf32>
    %73 = arith.addf %69, %72 : vector<8x64xf32>
    %74 = arith.addf %73, %3 : vector<8x64xf32>
    %c0_38 = arith.constant 0 : index
    %c0_39 = arith.constant 0 : index
    %c0_40 = arith.constant 0 : index
    %75 = vector.load %arg8[%c0_38, %c0_39, %c0_40] : memref<1x1x64xf32, #tpu.memory_space<vmem>>, vector<1x1x64xf32>
    %76 = vector.shape_cast %75 : vector<1x1x64xf32> to vector<1x64xf32>
    %c0_41 = arith.constant 0 : index
    %c0_42 = arith.constant 0 : index
    %c0_43 = arith.constant 0 : index
    %77 = vector.load %arg9[%c0_41, %c0_42, %c0_43] : memref<1x1x64xf32, #tpu.memory_space<vmem>>, vector<1x1x64xf32>
    %78 = vector.shape_cast %77 : vector<1x1x64xf32> to vector<1x64xf32>
    %cst_44 = arith.constant dense<0.000000e+00> : vector<8xf32>
    %79 = vector.multi_reduction <add>, %74, %cst_44 [1] : vector<8x64xf32> to vector<8xf32>
    %80 = vector.shape_cast %79 : vector<8xf32> to vector<8x1xf32>
    %cst_45 = arith.constant 6.400000e+01 : f32
    %81 = vector.broadcast %cst_45 : f32 to vector<8x1xf32>
    %82 = arith.divf %80, %81 : vector<8x1xf32>
    %83 = vector.broadcast %82 : vector<8x1xf32> to vector<8x64xf32>
    %84 = arith.subf %74, %83 : vector<8x64xf32>
    %85 = arith.mulf %84, %84 : vector<8x64xf32>
    %cst_46 = arith.constant dense<0.000000e+00> : vector<8xf32>
    %86 = vector.multi_reduction <add>, %85, %cst_46 [1] : vector<8x64xf32> to vector<8xf32>
    %87 = vector.shape_cast %86 : vector<8xf32> to vector<8x1xf32>
    %cst_47 = arith.constant 6.400000e+01 : f32
    %88 = vector.broadcast %cst_47 : f32 to vector<8x1xf32>
    %89 = arith.divf %87, %88 : vector<8x1xf32>
    %cst_48 = arith.constant 9.99999974E-6 : f32
    %90 = vector.broadcast %cst_48 : f32 to vector<8x1xf32>
    %91 = arith.addf %89, %90 : vector<8x1xf32>
    %92 = math.rsqrt %91 : vector<8x1xf32>
    %93 = vector.broadcast %92 : vector<8x1xf32> to vector<8x64xf32>
    %94 = arith.mulf %84, %93 : vector<8x64xf32>
    %95 = vector.broadcast %76 : vector<1x64xf32> to vector<8x64xf32>
    %96 = arith.mulf %94, %95 : vector<8x64xf32>
    %97 = vector.broadcast %78 : vector<1x64xf32> to vector<8x64xf32>
    %98 = arith.addf %96, %97 : vector<8x64xf32>
    %99 = arith.truncf %98 : vector<8x64xf32> to vector<8x64xbf16>
    %c0_49 = arith.constant 0 : index
    %c0_50 = arith.constant 0 : index
    %c0_51 = arith.constant 0 : index
    %100 = vector.load %arg10[%c0_49, %c0_50, %c0_51] : memref<1x64x128xbf16, #tpu.memory_space<vmem>>, vector<1x64x128xbf16>
    %101 = vector.shape_cast %100 : vector<1x64x128xbf16> to vector<64x128xbf16>
    %cst_52 = arith.constant dense<0.000000e+00> : vector<8x128xf32>
    %102 = tpu.matmul %99, %101, %cst_52 {dimension_numbers = #tpu.dot_dimension_numbers<[1], [0], [0], [1], [0, 0, 1, 1], [], []>} : vector<8x64xbf16>, vector<64x128xbf16>, vector<8x128xf32> -> vector<8x128xf32>
    %c0_53 = arith.constant 0 : index
    %c0_54 = arith.constant 0 : index
    %c0_55 = arith.constant 0 : index
    %103 = vector.load %arg11[%c0_53, %c0_54, %c0_55] : memref<1x1x128xf32, #tpu.memory_space<vmem>>, vector<1x1x128xf32>
    %104 = vector.shape_cast %103 : vector<1x1x128xf32> to vector<1x128xf32>
    %105 = vector.broadcast %104 : vector<1x128xf32> to vector<8x128xf32>
    %106 = arith.addf %102, %105 : vector<8x128xf32>
    %107 = arith.mulf %106, %106 : vector<8x128xf32>
    %108 = arith.mulf %106, %107 : vector<8x128xf32>
    %cst_56 = arith.constant 4.471500e-02 : f32
    %109 = vector.broadcast %cst_56 : f32 to vector<8x128xf32>
    %110 = arith.mulf %109, %108 : vector<8x128xf32>
    %111 = arith.addf %106, %110 : vector<8x128xf32>
    %cst_57 = arith.constant 0.797884583 : f32
    %112 = vector.broadcast %cst_57 : f32 to vector<8x128xf32>
    %113 = arith.mulf %112, %111 : vector<8x128xf32>
    %114 = math.tanh %113 : vector<8x128xf32>
    %cst_58 = arith.constant 1.000000e+00 : f32
    %115 = vector.broadcast %cst_58 : f32 to vector<8x128xf32>
    %116 = arith.addf %115, %114 : vector<8x128xf32>
    %cst_59 = arith.constant 5.000000e-01 : f32
    %117 = vector.broadcast %cst_59 : f32 to vector<8x128xf32>
    %118 = arith.mulf %117, %116 : vector<8x128xf32>
    %119 = arith.mulf %106, %118 : vector<8x128xf32>
    %120 = arith.truncf %119 : vector<8x128xf32> to vector<8x128xbf16>
    %c0_60 = arith.constant 0 : index
    %c0_61 = arith.constant 0 : index
    %c0_62 = arith.constant 0 : index
    %121 = vector.load %arg12[%c0_60, %c0_61, %c0_62] : memref<1x128x64xbf16, #tpu.memory_space<vmem>>, vector<1x128x64xbf16>
    %122 = vector.shape_cast %121 : vector<1x128x64xbf16> to vector<128x64xbf16>
    %cst_63 = arith.constant dense<0.000000e+00> : vector<8x64xf32>
    %123 = tpu.matmul %120, %122, %cst_63 {dimension_numbers = #tpu.dot_dimension_numbers<[1], [0], [0], [1], [0, 0, 1, 1], [], []>} : vector<8x128xbf16>, vector<128x64xbf16>, vector<8x64xf32> -> vector<8x64xf32>
    %c0_64 = arith.constant 0 : index
    %c0_65 = arith.constant 0 : index
    %c0_66 = arith.constant 0 : index
    %124 = vector.load %arg13[%c0_64, %c0_65, %c0_66] : memref<1x1x64xf32, #tpu.memory_space<vmem>>, vector<1x1x64xf32>
    %125 = vector.shape_cast %124 : vector<1x1x64xf32> to vector<1x64xf32>
    %126 = vector.broadcast %125 : vector<1x64xf32> to vector<8x64xf32>
    %127 = arith.addf %123, %126 : vector<8x64xf32>
    %128 = arith.addf %127, %98 : vector<8x64xf32>
    %c0_67 = arith.constant 0 : index
    %c0_68 = arith.constant 0 : index
    %c0_69 = arith.constant 0 : index
    %129 = vector.load %arg14[%c0_67, %c0_68, %c0_69] : memref<1x1x64xf32, #tpu.memory_space<vmem>>, vector<1x1x64xf32>
    %130 = vector.shape_cast %129 : vector<1x1x64xf32> to vector<1x64xf32>
    %c0_70 = arith.constant 0 : index
    %c0_71 = arith.constant 0 : index
    %c0_72 = arith.constant 0 : index
    %131 = vector.load %arg15[%c0_70, %c0_71, %c0_72] : memref<1x1x64xf32, #tpu.memory_space<vmem>>, vector<1x1x64xf32>
    %132 = vector.shape_cast %131 : vector<1x1x64xf32> to vector<1x64xf32>
    %cst_73 = arith.constant dense<0.000000e+00> : vector<8xf32>
    %133 = vector.multi_reduction <add>, %128, %cst_73 [1] : vector<8x64xf32> to vector<8xf32>
    %134 = vector.shape_cast %133 : vector<8xf32> to vector<8x1xf32>
    %cst_74 = arith.constant 6.400000e+01 : f32
    %135 = vector.broadcast %cst_74 : f32 to vector<8x1xf32>
    %136 = arith.divf %134, %135 : vector<8x1xf32>
    %137 = vector.broadcast %136 : vector<8x1xf32> to vector<8x64xf32>
    %138 = arith.subf %128, %137 : vector<8x64xf32>
    %139 = arith.mulf %138, %138 : vector<8x64xf32>
    %cst_75 = arith.constant dense<0.000000e+00> : vector<8xf32>
    %140 = vector.multi_reduction <add>, %139, %cst_75 [1] : vector<8x64xf32> to vector<8xf32>
    %141 = vector.shape_cast %140 : vector<8xf32> to vector<8x1xf32>
    %cst_76 = arith.constant 6.400000e+01 : f32
    %142 = vector.broadcast %cst_76 : f32 to vector<8x1xf32>
    %143 = arith.divf %141, %142 : vector<8x1xf32>
    %cst_77 = arith.constant 9.99999974E-6 : f32
    %144 = vector.broadcast %cst_77 : f32 to vector<8x1xf32>
    %145 = arith.addf %143, %144 : vector<8x1xf32>
    %146 = math.rsqrt %145 : vector<8x1xf32>
    %147 = vector.broadcast %146 : vector<8x1xf32> to vector<8x64xf32>
    %148 = arith.mulf %138, %147 : vector<8x64xf32>
    %149 = vector.broadcast %130 : vector<1x64xf32> to vector<8x64xf32>
    %150 = arith.mulf %148, %149 : vector<8x64xf32>
    %151 = vector.broadcast %132 : vector<1x64xf32> to vector<8x64xf32>
    %152 = arith.addf %150, %151 : vector<8x64xf32>
    %c0_78 = arith.constant 0 : index
    %c0_79 = arith.constant 0 : index
    %153 = vector.load %arg18[%c0_78, %c0_79] : memref<8x64xf32, #tpu.memory_space<vmem>>, vector<8x64xf32>
    tpu.vector_store %arg18[%c0_78, %c0_79], %152 {strides = array<i32>} : memref<8x64xf32, #tpu.memory_space<vmem>>, vector<8x64xf32>,
    %c0_80 = arith.constant 0 : index
    %c0_81 = arith.constant 0 : index
    %c0_82 = arith.constant 0 : index
    %c0_83 = arith.constant 0 : index
    %154 = vector.load %arg16[%c0_80, %c0_81, %c0_82, %c0_83] : memref<1x1x8x64xf32, #tpu.memory_space<vmem>>, vector<1x1x8x64xf32>
    %155 = vector.shape_cast %154 : vector<1x1x8x64xf32> to vector<8x64xf32>
    %156 = vector.shape_cast %152 : vector<8x64xf32> to vector<1x1x8x64xf32>
    tpu.vector_store %arg16[%c0_80, %c0_81, %c0_82, %c0_83], %156 {strides = array<i32>} : memref<1x1x8x64xf32, #tpu.memory_space<vmem>>, vector<1x1x8x64xf32>,
    return
  }
  func.func @transform_0(%arg0: i32, %arg1: i32) -> (i32, i32, i32) {
    %c0_i32 = arith.constant 0 : i32
    %c0_i32_0 = arith.constant 0 : i32
    %c0_i32_1 = arith.constant 0 : i32
    return %arg0, %c0_i32, %c0_i32_0 : i32, i32, i32
  }
  func.func @transform_1(%arg0: i32, %arg1: i32) -> (i32, i32, i32) {
    %c0_i32 = arith.constant 0 : i32
    %c0_i32_0 = arith.constant 0 : i32
    %c0_i32_1 = arith.constant 0 : i32
    return %arg0, %c0_i32, %c0_i32_0 : i32, i32, i32
  }
  func.func @transform_2(%arg0: i32, %arg1: i32) -> (i32, i32, i32) {
    %c0_i32 = arith.constant 0 : i32
    %c0_i32_0 = arith.constant 0 : i32
    %c0_i32_1 = arith.constant 0 : i32
    return %arg1, %c0_i32, %c0_i32_0 : i32, i32, i32
  }
  func.func @transform_3(%arg0: i32, %arg1: i32) -> (i32, i32, i32) {
    %c0_i32 = arith.constant 0 : i32
    %c0_i32_0 = arith.constant 0 : i32
    %c0_i32_1 = arith.constant 0 : i32
    return %arg1, %c0_i32, %c0_i32_0 : i32, i32, i32
  }
  func.func @transform_4(%arg0: i32, %arg1: i32) -> (i32, i32, i32) {
    %c0_i32 = arith.constant 0 : i32
    %c0_i32_0 = arith.constant 0 : i32
    %c0_i32_1 = arith.constant 0 : i32
    return %arg1, %c0_i32, %c0_i32_0 : i32, i32, i32
  }
  func.func @transform_5(%arg0: i32, %arg1: i32) -> (i32, i32, i32) {
    %c0_i32 = arith.constant 0 : i32
    %c0_i32_0 = arith.constant 0 : i32
    %c0_i32_1 = arith.constant 0 : i32
    return %arg1, %c0_i32, %c0_i32_0 : i32, i32, i32
  }
  func.func @transform_6(%arg0: i32, %arg1: i32) -> (i32, i32, i32) {
    %c0_i32 = arith.constant 0 : i32
    %c0_i32_0 = arith.constant 0 : i32
    %c0_i32_1 = arith.constant 0 : i32
    return %arg1, %c0_i32, %c0_i32_0 : i32, i32, i32
  }
  func.func @transform_7(%arg0: i32, %arg1: i32) -> (i32, i32, i32) {
    %c0_i32 = arith.constant 0 : i32
    %c0_i32_0 = arith.constant 0 : i32
    %c0_i32_1 = arith.constant 0 : i32
    return %arg1, %c0_i32, %c0_i32_0 : i32, i32, i32
  }
  func.func @transform_8(%arg0: i32, %arg1: i32) -> (i32, i32, i32) {
    %c0_i32 = arith.constant 0 : i32
    %c0_i32_0 = arith.constant 0 : i32
    %c0_i32_1 = arith.constant 0 : i32
    return %arg1, %c0_i32, %c0_i32_0 : i32, i32, i32
  }
  func.func @transform_9(%arg0: i32, %arg1: i32) -> (i32, i32, i32) {
    %c0_i32 = arith.constant 0 : i32
    %c0_i32_0 = arith.constant 0 : i32
    %c0_i32_1 = arith.constant 0 : i32
    return %arg1, %c0_i32, %c0_i32_0 : i32, i32, i32
  }
  func.func @transform_10(%arg0: i32, %arg1: i32) -> (i32, i32, i32) {
    %c0_i32 = arith.constant 0 : i32
    %c0_i32_0 = arith.constant 0 : i32
    %c0_i32_1 = arith.constant 0 : i32
    return %arg1, %c0_i32, %c0_i32_0 : i32, i32, i32
  }
  func.func @transform_11(%arg0: i32, %arg1: i32) -> (i32, i32, i32) {
    %c0_i32 = arith.constant 0 : i32
    %c0_i32_0 = arith.constant 0 : i32
    %c0_i32_1 = arith.constant 0 : i32
    return %arg1, %c0_i32, %c0_i32_0 : i32, i32, i32
  }
  func.func @transform_12(%arg0: i32, %arg1: i32) -> (i32, i32, i32) {
    %c0_i32 = arith.constant 0 : i32
    %c0_i32_0 = arith.constant 0 : i32
    %c0_i32_1 = arith.constant 0 : i32
    return %arg1, %c0_i32, %c0_i32_0 : i32, i32, i32
  }
  func.func @transform_13(%arg0: i32, %arg1: i32) -> (i32, i32, i32) {
    %c0_i32 = arith.constant 0 : i32
    %c0_i32_0 = arith.constant 0 : i32
    %c0_i32_1 = arith.constant 0 : i32
    return %arg1, %c0_i32, %c0_i32_0 : i32, i32, i32
  }
  func.func @transform_14(%arg0: i32, %arg1: i32) -> (i32, i32, i32, i32) {
    %c0_i32 = arith.constant 0 : i32
    %c0_i32_0 = arith.constant 0 : i32
    %c0_i32_1 = arith.constant 0 : i32
    return %arg1, %arg0, %c0_i32, %c0_i32_0 : i32, i32, i32, i32
  }
  func.func @transform_15(%arg0: i32, %arg1: i32) -> (i32, i32, i32, i32) {
    %c0_i32 = arith.constant 0 : i32
    %c0_i32_0 = arith.constant 0 : i32
    %c0_i32_1 = arith.constant 0 : i32
    return %arg1, %arg0, %c0_i32, %c0_i32_0 : i32, i32, i32, i32
  }
}

</mosaic_0001>

<bundles_post_ra>
// kernel: pretrained_model_forward.1
= control target key start
LH: loop header
LB: loop body
LE: loop exit
PB: predicated region body
PF: predicated region fallthrough
CT: control target
= control target key end

     0   :  { %s1878_s18 = smov 0   ;;  %s1880_s19 = smov 0   ;;  %s2129_s0 = inlined_call_operand.vmem [shape: f32[2,8,64], index: 0, kind: input, shape index: {}]   ;;  %s2130_s1 = inlined_call_operand.vmem [shape: f32[2,1,8], index: 1, kind: input, shape index: {}]   ;;  %s2131_s2 = inlined_call_operand.vmem [shape: bf16[2,64,192], index: 2, kind: input, shape index: {}]   ;;  %s2132_s3 = inlined_call_operand.vmem [shape: f32[2,1,192], index: 3, kind: input, shape index: {}]   ;;  %s2133_s4 = inlined_call_operand.vmem [shape: bf16[2,64,64], index: 4, kind: input, shape index: {}]   ;;  %s2134_s5 = inlined_call_operand.vmem [shape: f32[2,1,64], index: 5, kind: input, shape index: {}, may-alias: {5,7,11,13}]   ;;  %s2135_s6 = inlined_call_operand.vmem [shape: f32[2,1,64], index: 6, kind: input, shape index: {}, may-alias: {6,12}]   ;;  %s2136_s7 = inlined_call_operand.vmem [shape: f32[2,1,64], index: 7, kind: input, shape index: {}, may-alias: {5,7,11,13}]   ;;  %s2137_s8 = inlined_call_operand.vmem [shape: bf16[2,64,128], index: 8, kind: input, shape index: {}]   ;;  %s2138_s9 = inlined_call_operand.vmem [shape: f32[2,1,128], index: 9, kind: input, shape index: {}]   ;;  %s2139_s10 = inlined_call_operand.vmem [shape: bf16[2,128,64], index: 10, kind: input, shape index: {}]   ;;  %s2140_s11 = inlined_call_operand.vmem [shape: f32[2,1,64], index: 11, kind: input, shape index: {}, may-alias: {5,7,11,13}]   ;;  %s2141_s12 = inlined_call_operand.vmem [shape: f32[2,1,64], index: 12, kind: input, shape index: {}, may-alias: {6,12}]   ;;  %s2142_s13 = inlined_call_operand.vmem [shape: f32[2,1,64], index: 13, kind: input, shape index: {}, may-alias: {5,7,11,13}]   ;;  %s2143_s14 = inlined_call_operand.vmem [shape: f32[2,2,8,64], index: 14, kind: output, shape index: {0}]   ;;  %s2144_s15 = inlined_call_operand.vmem [shape: f32[2,4,8,8], index: 15, kind: output, shape index: {1}]  }
   0x1   :  { %2151 = sst [smem:[#allocation13_spill]] %s2129_s0  ;;  %s1882_s20 = smov 0  }
   0x2   :  { %2152 = sst [smem:[#allocation14_spill]] %s2130_s1  ;;  %s1884_s21 = smov 0  }
   0x3   :  { %2153 = sst [smem:[#allocation15_spill]] %s2131_s2  ;;  %s1886_s22 = smov 0  }
   0x4   :  { %2154 = sst [smem:[#allocation16_spill]] %s2132_s3 }
   0x5   :  { %2155 = sst [smem:[#allocation17_spill]] %s2133_s4 }
   0x6   :  { %2156 = sst [smem:[#allocation18_spill]] %s2137_s8 }
   0x7   :  { %2157 = sst [smem:[#allocation19_spill]] %s2139_s10 }
   0x8   :  { %2158 = sst [smem:[#allocation20_spill]] %s2142_s13 }
   0x9   :  { %2159 = sst [smem:[#allocation21_spill]] %s2143_s14 }
   0xa   :  { %2160 = sst [smem:[#allocation22_spill]] %s2144_s15 }
   0xb LB: > { %2161 = sst [smem:[#allocation4_spill]] %s1776_s18  ;;  %s35_s23 = sadd.s32 1, %s1784_s20  ;;  %s1792_s22 = sphi %s1886_s22, %s26_s22   ;;  %s1788_s21 = sphi %s1884_s21, %s2197_s21   ;;  %s1784_s20 = sphi %s1882_s20, %s2196_s20   ;;  %s1780_s19 = sphi %s1880_s19, %s2195_s19   ;;  %s1776_s18 = sphi %s1878_s18, %s2194_s18  }
   0xc   : > { %2162 = sst [smem:[#allocation5_spill]] %s1784_s20  ;;  %s38_s24 = sadd.s32 1, %s1788_s21 }
   0xd   : > { %2163 = sst [smem:[#allocation6_spill]] %s1788_s21  ;;  %p36_p0 = scmp.ge.s32.totalorder %s35_s23, 2 }
   0xe   : > { %2164 = sst [smem:[#allocation7_spill]] %s1792_s22  ;;  %p1534_p1 = scmp.ge.s32.totalorder %s1792_s22, 1 }
   0xf   : > { %p568_p2 = scmp.lt.s32.totalorder %s1792_s22, 5  ;;  %s2199_s23 = smov (%p36_p0, %s35_s23), 0 }
  0x10   : > { %2165 = sst [smem:[#allocation8_spill]] %s2199_s23  ;;  %s2201_s24 = smov (!%p36_p0, %s38_s24), %s1788_s21 }
  0x11   : > { %p569_p3 = pnand %p1534_p1, %p568_p2  ;;  %p40_p4 = scmp.ge.s32.totalorder %s2201_s24, 2 }
  0x13   : > { %s2203_s24 = smov (%p40_p4, %s2201_s24), 0  ;;  %572 = sbr.rel (%p569_p3) target bundleno = 1942 (0x796), region = 76 }
  0x14   : > { %2166 = sst [smem:[#allocation9_spill]] %s2203_s24 }
  0x18   : > { %p675_p5 = scmp.lt.s32.totalorder %s1780_s19, 1  ;;  %p682_p6 = scmp.lt.s32.totalorder %s1776_s18, 1 }
  0x19   : > { %s1547_s25 = sshll.u32 %s1780_s19, 1  ;;  %s2168_s0 = sld [smem:[#allocation13_spill]] }
  0x1a   : > { %s2205_s19 = smov (!%p675_p5, %s1780_s19), 1  ;;  %s2169_s2 = sld [smem:[#allocation15_spill]] }
  0x1b   : > { %s1919_s26 = scalar_select %p682_p6, %s1776_s18, 1 }
  0x1c   : > { %s1535_s27 = sshll.u32 %s2205_s19, 3  ;;  %s2171_s3 = sld [smem:[#allocation16_spill]] }
  0x1d   : > { %s1658_s23 = sshll.u32 %s1919_s26, 6  ;;  %s1538_s18 = sshll.u32 %s1919_s26, 1 }
  0x1e   : > { %s1659_s28 = sshll.u32 %s1919_s26, 5  ;;  %s2173_s4 = sld [smem:[#allocation17_spill]] }
  0x1f   : > { %s678_s24 = scalar_lea.vmem %s2168_s0, %s1535_s27  ;;  %s2175_s8 = sld [smem:[#allocation18_spill]] }
  0x20   : > { %s1933_s22 = scalar_lea.vmem %s2169_s2, %s1658_s23  ;;  %s2176_s10 = sld [smem:[#allocation19_spill]] }
  0x21   : > { %2170 = sst [smem:[#allocation10_spill]] %s1933_s22  ;;  %p738_p7 = scmp.lt.s32.totalorder %s1547_s25, 3 }
  0x22   : > { %s1939_s13 = scalar_lea.vmem %s2171_s3, %s1538_s18  ;;  %s2177_s15 = sld [smem:[#allocation20_spill]] }
  0x23   : > { %2172 = sst [smem:[#allocation11_spill]] %s1939_s13  ;;  %s1548_s27 = sshll.u32 %s1919_s26, 2 }
  0x24   : > { %s1945_s16 = scalar_lea.vmem %s2173_s4, %s1659_s28  ;;  %s2207_s25 = smov (!%p738_p7, %s1547_s25), 3 }
  0x25   : > { %2174 = sst [smem:[#allocation12_spill]] %s1945_s16  ;;  %s1962_s13 = scalar_lea.vmem %s2175_s8, %s1659_s28 }
  0x26   : > { %s1971_s17 = scalar_lea.vmem %s2176_s10, %s1658_s23  ;;  %s732_s8 = sadd.s32 %s1538_s18, %s2205_s19 }
  0x27   : > { %s1546_s30 = sshll.u32 %s732_s8, 3  ;;  %s2178_s16 = sld [smem:[#allocation21_spill]] }
  0x28   : > { %s726_s0 = scalar_lea.vmem %s2177_s15, %s1919_s26  ;;  %s741_s20 = sadd.s32 %s1548_s27, %s2207_s25 }
  0x29   : > { %s1549_s21 = sshll.u32 %s741_s20, 3  ;;  %s2179_s1 = sld [smem:[#allocation22_spill]] }
  0x2a   : > { %s2180_s14 = sld [smem:[#allocation4_spill]] }
  0x2d   : > { %s1989_s23 = scalar_lea.vmem %s2178_s16, %s1546_s30 }
  0x2f   : > { %s1995_s22 = scalar_lea.vmem %s2179_s1, %s1549_s21 }
  0x30   : > { %p1550_p8 = scmp.ne.s32.totalorder %s2180_s14, 0 }
  0x32   : > { %749 = sbr.rel (%p1550_p8) target bundleno = 57 (0x39), region = 80 }
  0x37   : > { %v750_v0 = vld [vmem:[%s678_s24] sm:$0xff]  ;;  %vm751_vm0 = vcmask 523264  }
  0x38   : > { %752 = vst.msk [vmem:[#allocation2] sm:$0xff] %vm751_vm0, %v750_v0 }
  0x39 PF: > { %s2181_s8 = sld [smem:[#allocation10_spill]]  ;;  %vm810_vm1 = vcmask 523264   ;;  %s1794_s4 = smov 96   ;;  %vm848_vm2 = vcmask 261120   ;;  %vm868_vm3 = vcmask 64512   ;;  %vm898_vm4 = vcmask 1043456  }
  0x3a   : > { %s2182_s2 = sld [smem:[#allocation11_spill]]  ;;  %s1795_s10 = smov 64   ;;  %vm992_vm13 = vcmask 523520  }
  0x3b   : > { %s1796_s18 = smov 32   ;;  %s2183_s14 = sld [smem:[#allocation14_spill]] }
  0x3c   : > { %s2186_s30 = scalar_lea.vmem %s2134_s5, %s1919_s26  ;;  %s2187_s16 = scalar_lea.vmem %s2135_s6, %s1919_s26 }
  0x3d   : > { %s2188_s21 = scalar_lea.vmem %s2136_s7, %s1919_s26  ;;  %s2191_s24 = scalar_lea.vmem %s2141_s12, %s1919_s26 }
  0x3f   : > { %v1577_v1 = vld [vmem:[%s2181_s8 + $0x30] sm:$0xf]  ;;  %v1669_v2 = vld [vmem:[%s2181_s8 + $0x34] sm:$0xf0]  ;;  %v1569_v3 = vld [vmem:[%s2181_s8 + $0x20] sm:$0xf] }
  0x40   : > { %v1578_v4 = vor.u32 %v1669_v2, %v1577_v1  ;;  %v1667_v5 = vld [vmem:[%s2181_s8 + $0x24] sm:$0xf0]  ;;  %v1561_v7 = vld [vmem:[%s2181_s8 + $0x10] sm:$0xf]  ;;  %v1665_v8 = vld [vmem:[%s2181_s8 + $0x14] sm:$0xf0] }
  0x41   : > { %v1570_v6 = vor.u32 %v1667_v5, %v1569_v3  ;;  %v1562_v9 = vor.u32 %v1665_v8, %v1561_v7  ;;  %v1553_v10 = vld [vmem:[%s2181_s8] sm:$0xf]  ;;  %v1663_v11 = vld [vmem:[%s2181_s8 + $0x4] sm:$0xf0]  ;;  %v1668_v26 = vld [vmem:[%s2181_s8 + $0x34] sm:$0xf]  ;;  %s2184_s3 = scalar_lea.vmem %s2183_s14, %s2205_s19 }
  0x42   : > { %818 = vmatpush.bf16.msra.mxu0 %v1578_v4  ;;  %v1554_v12 = vor.u32 %v1663_v11, %v1553_v10  ;;  %v2006_v13 = vld [vmem:[#allocation2] sm:$0xff]  ;;  %v1579_v27 = vld [vmem:[%s2181_s8 + $0x38] sm:$0xf0]  ;;  %v1571_v30 = vld [vmem:[%s2181_s8 + $0x28] sm:$0xf0]  ;;  %s2185_s19 = sld [smem:[#allocation12_spill]] }
  0x43   : > { %v754_v14 = vpack.c.bf16 %v2006_v13, %v2006_v13  ;;  %v764_v15 = vld [vmem:[%s2182_s2] sm:$0x3]  ;;  %v1666_v28 = vld [vmem:[%s2181_s8 + $0x24] sm:$0xf]  ;;  %v1582_v29 = vor.u32 %v1668_v26, %v1579_v27  ;;  %v1664_v32 = vld [vmem:[%s2181_s8 + $0x14] sm:$0xf] }
  0x44   : > { %v766_v16 = vperm.slane %v764_v15, 0  ;;  %v1574_v31 = vor.u32 %v1666_v28, %v1571_v30  ;;  %v1563_v33 = vld [vmem:[%s2181_s8 + $0x18] sm:$0xf0]  ;;  %v1662_v35 = vld [vmem:[%s2181_s8 + $0x4] sm:$0xf]  ;;  %v767_v50 = vperm.slane %v764_v15, 1 }
  0x45   : > { %831 = vmatpush.bf16.msra.mxu1 %v1582_v29  ;;  %v1566_v34 = vor.u32 %v1664_v32, %v1563_v33  ;;  %v1555_v36 = vld [vmem:[%s2181_s8 + $0x8] sm:$0xf0]  ;;  %v1730_v38 = vld [vmem:[%s2184_s3] ss:$0 sm:$0xff]  ;;  %s2189_s8 = scalar_lea.vmem %s2138_s9, %s1919_s26 }
  0x46   : > { %819 = vmatpush.bf16.msra.mxu0 %v1570_v6  ;;  %v1558_v37 = vor.u32 %v1662_v35, %v1555_v36 }
  0x48   : > { %v1673_v28 = vld [vmem:[%s2185_s19 + $0x18] sm:$0xff]  ;;  %v1672_v29 = vld [vmem:[%s2185_s19 + $0x10] sm:$0xff]  ;;  %v1670_v35 = vld [vmem:[%s2185_s19] sm:$0xff] }
  0x49   : > { %832 = vmatpush.bf16.msra.mxu1 %v1574_v31 }
  0x4a   : > { %820 = vmatpush.bf16.msra.mxu0 %v1562_v9 }
  0x4d   : > { %833 = vmatpush.bf16.msra.mxu1 %v1566_v34  ;;  %v1671_v34 = vld [vmem:[%s2185_s19 + $0x8] sm:$0xff] }
  0x4e   : > { %821 = vmatpush.bf16.msra.mxu0 %v1554_v12 }
  0x51   : > { %1583 = vmatmul.msk.bf16.vlgmr.msra.gmra.mxu0 %vm810_vm1, %v754_v14  ;;  %834 = vmatpush.bf16.msra.mxu1 %v1558_v37 }
  0x52   : > { %1039 = vmatpush.bf16.msrb.mxu0 %v1673_v28 }
  0x54   : > { %1584 = vmatmul.msk.bf16.vlgmr.msra.gmra.mxu1 %vm810_vm1, %v754_v14 }
  0x56   : > { %1040 = vmatpush.bf16.msrb.mxu0 %v1672_v29 }
  0x5a   : > { %1041 = vmatpush.bf16.msrb.mxu0 %v1671_v34 }
  0x5e   : > { %1042 = vmatpush.bf16.msrb.mxu0 %v1670_v35 }
  0xce   : > { %v823_v17 = vpop.f32.mrf.mxu0 }
  0xcf   : > { %v824_v18 = vadd.f32 %v823_v17, %v766_v16 }
  0xd1   : > { %v840_v19 = vpack.c.bf16 %v824_v18, %v824_v18  ;;  %v836_v52 = vpop.f32.mrf.mxu1 }
  0xd2   : > { %v837_v54 = vadd.f32 %v836_v52, %v767_v50 }
  0xd3   : > { %916 = vrot.lane.b32.xlu1 %v840_v19, %s1794_s4  ;;  %846 = vrot.lane.b32.xlu0 %v840_v19, %s1795_s10 }
  0xd4   : > { %v841_v57 = vpack.c.bf16 %v837_v54, %v837_v54 }
  0xd6   : > { %v825_v20 = vpop.f32.mrf.mxu0  ;;  %v900_v59 = vsel %vm898_vm4, %v841_v57, 0 }
  0xd9   : > { %v838_v60 = vpop.f32.mrf.mxu1 }
  0xda   : > { %v1685_v60 = vld [vmem:[%s1971_s17 + $0x38] sm:$0xff] }
  0xdb   : > { %918 = vrot.lane.b32.xlu0 %v840_v19, %s1796_s18 }
 0x145   : > { %v847_v21 = vpop.permute.xlu0 %846  ;;  %v917_v25 = vpop.permute.xlu1 %916 }
 0x146   : > { %v853_v22 = vsel %vm848_vm2, %v847_v21, 0 }
 0x147   : > { %862 = vmatpush.bf16.xpose.msra.mxu2 %v853_v22 }
 0x14d   : > { %v919_v23 = vpop.permute.xlu0 %918 }
 0x14e   : > { %1585 = vmatmul.msk.bf16.vlgmr.msra.gmra.mxu2 %vm848_vm2, %v840_v19  ;;  %v924_v24 = vsel %vm848_vm2, %v919_v23, 0 }
 0x14f   : > { %933 = vmatpush.bf16.xpose.msra.mxu3 %v924_v24  ;;  %909 = vmatpush.bf16.msrb.mxu2 %v900_v59  ;;  %v1674_v59 = vld [vmem:[%s1962_s13] sm:$0xff] }
 0x156   : > { %1587 = vmatmul.msk.bf16.vlgmr.msra.gmra.mxu3 %vm848_vm2, %v917_v25 }
 0x157   : > { %1219 = vmatpush.bf16.msrb.mxu3 %v1685_v60 }
 0x1d1   : > { %v864_v39 = vpop.f32.mrf.mxu2 }
 0x1d2   : > { %v865_v40 = vadd.f32 %v1730_v38, %v864_v39  ;;  %v1731_v39 = vld [vmem:[%s2186_s30] ss:$0 sm:$0xff] }
 0x1d4   : > { %v869_v41 = vsel %vm868_vm3, %v865_v40, -inf }
 0x1d5   : > { %870 = vmax.xlane.f32.xlu1 %v869_v41 }
 0x1d9   : > { %v866_v42 = vpop.f32.mrf.mxu2  ;;  %v935_v43 = vpop.f32.mrf.mxu3 }
 0x1da   : > { %v936_v44 = vadd.f32 %v1730_v38, %v935_v43 }
 0x1dc   : > { %v939_v45 = vsel %vm868_vm3, %v936_v44, -inf }
 0x1dd   : > { %940 = vmax.xlane.f32.xlu2 %v939_v45  ;;  %v1797_v45 = vmov 64.0  }
 0x1e1   : > { %v937_v46 = vpop.f32.mrf.mxu3 }
 0x248   : > { %v871_v47 = vpop.xlane.xlu1 %870 }
 0x249   : > { %v872_v48 = vsub.f32 %v865_v40, %v871_v47 }
 0x24b   : > { %v873_v49 = vmul.f32 1.442695, %v872_v48 }
 0x24d   : > { %1738 = vpow2.f32 %v873_v49 }
 0x250   : > { %v941_v51 = vpop.xlane.xlu2 %940 }
 0x251   : > { %v942_v53 = vsub.f32 %v936_v44, %v941_v51 }
 0x253   : > { %v1739_v55 = vpop.eup %1738  ;;  %v943_v56 = vmul.f32 1.442695, %v942_v53 }
 0x254   : > { %v875_v58 = vsel %vm868_vm3, %v1739_v55, 0.0 }
 0x255   : > { %1740 = vpow2.f32 %v943_v56  ;;  %876 = vadd.xlane.f32.xlu2 %v875_v58  ;;  %v1677_v56 = vld [vmem:[%s1962_s13 + $0x18] sm:$0xff]  ;;  %v1675_v58 = vld [vmem:[%s1962_s13 + $0x8] sm:$0xff] }
 0x256   : > { %1132 = vmatpush.bf16.msrb.mxu1 %v1677_v56 }
 0x25b   : > { %v1741_v61 = vpop.eup %1740 }
 0x25c   : > { %v945_v62 = vsel %vm868_vm3, %v1741_v61, 0.0 }
 0x25d   : > { %946 = vadd.xlane.f32.xlu0 %v945_v62 }
 0x26d   : > { %967 = vrot.lane.b32.xlu2 %v841_v57, %s1794_s4  ;;  %v1676_v57 = vld [vmem:[%s1962_s13 + $0x10] sm:$0xff]  ;;  %s2190_s4 = scalar_lea.vmem %s2140_s11, %s1919_s26 }
 0x26e   : > { %1133 = vmatpush.bf16.msrb.mxu1 %v1676_v57  ;;  %v1735_v35 = vld [vmem:[%s2190_s4] ss:$0 sm:$0xff] }
 0x272   : > { %1134 = vmatpush.bf16.msrb.mxu1 %v1675_v58 }
 0x276   : > { %1135 = vmatpush.bf16.msrb.mxu1 %v1674_v59 }
 0x2c8   : > { %v877_v63 = vpop.xlane.xlu2 %876 }
 0x2c9   : > { %1742 = vrcp.f32 %v877_v63  ;;  %v889_v6 = vand.u32 2147483648, %v877_v63  ;;  %v887_v8 = vand.u32 2147483647, %v877_v63  ;;  %vm883_vm6 = vweird.f32 %v877_v63 }
 0x2cb   : > { %v890_v11 = vor.u32 1.1754944e-38, %v889_v6  ;;  %vm888_vm8 = vcmp.eq.f32.partialorder %v887_v8, 8.507059e+37  ;;  %v1732_v6 = vld [vmem:[%s2187_s16] ss:$0 sm:$0xff] }
 0x2cf   : > { %v1743_v0 = vpop.eup %1742 }
 0x2d0   : > { %v879_v1 = vmul.f32 %v1743_v0, %v877_v63  ;;  %v947_v2 = vpop.xlane.xlu0 %946  ;;  %v968_v3 = vpop.permute.xlu2 %967  ;;  %vm884_vm5 = vweird.f32 %v1743_v0 }
 0x2d1   : > { %1744 = vrcp.f32 %v947_v2  ;;  %v973_v5 = vsel %vm898_vm4, %v968_v3, 0  ;;  %vm885_vm7 = vmor %vm883_vm6, %vm884_vm5  ;;  %v959_v18 = vand.u32 2147483648, %v947_v2  ;;  %v957_v20 = vand.u32 2147483647, %v947_v2 }
 0x2d2   : > { %v880_v4 = vsub.f32 1.0, %v879_v1  ;;  %982 = vmatpush.bf16.msra.mxu2 %v973_v5  ;;  %vm953_vm10 = vweird.f32 %v947_v2  ;;  %1746 = vrcp.f32 %v1797_v45 }
 0x2d3   : > { %v960_v23 = vor.u32 1.1754944e-38, %v959_v18  ;;  %vm958_vm12 = vcmp.eq.f32.partialorder %v957_v20, 8.507059e+37  ;;  %v1680_v18 = vld [vmem:[%s1971_s17 + $0x10] sm:$0xff]  ;;  %v1678_v20 = vld [vmem:[%s1971_s17] sm:$0xff] }
 0x2d4   : > { %v881_v7 = vmul.f32 %v1743_v0, %v880_v4 }
 0x2d6   : > { %v882_v9 = vadd.f32 %v1743_v0, %v881_v7 }
 0x2d7   : > { %v1745_v10 = vpop.eup %1744 }
 0x2d8   : > { %v886_v12 = vsel %vm885_vm7, %v1743_v0, %v882_v9  ;;  %v949_v14 = vmul.f32 %v1745_v10, %v947_v2  ;;  %vm954_vm9 = vweird.f32 %v1745_v10  ;;  %v1747_v46 = vpop.eup %1746  ;;  %v1733_v9 = vld [vmem:[%s2188_s21] ss:$0 sm:$0xff] }
 0x2d9   : > { %v891_v15 = vsel %vm888_vm8, %v890_v11, %v886_v12  ;;  %vm955_vm11 = vmor %vm953_vm10, %vm954_vm9  ;;  %v1055_v47 = vmul.f32 64.0, %v1747_v46  ;;  %vm1059_vm14 = vweird.f32 %v1747_v46 }
 0x2da   : > { %v950_v16 = vsub.f32 1.0, %v949_v14  ;;  %v892_v17 = vmul.f32 %v1739_v55, %v891_v15  ;;  %v1684_v14 = vld [vmem:[%s1971_s17 + $0x30] sm:$0xff]  ;;  %v1683_v15 = vld [vmem:[%s1971_s17 + $0x28] sm:$0xff] }
 0x2db   : > { %v1056_v48 = vsub.f32 1.0, %v1055_v47  ;;  %1220 = vmatpush.bf16.msrb.mxu3 %v1684_v14 }
 0x2dc   : > { %v951_v19 = vmul.f32 %v1745_v10, %v950_v16  ;;  %893 = vst.msk [vmem:[%s1995_s22] sm:$0xff] %vm868_vm3, %v892_v17  ;;  %v894_v21 = vpack.c.bf16 %v892_v17, %v892_v17  ;;  %v1682_v16 = vld [vmem:[%s1971_s17 + $0x20] sm:$0xff]  ;;  %v1681_v17 = vld [vmem:[%s1971_s17 + $0x18] sm:$0xff] }
 0x2dd   : > { %v1057_v49 = vmul.f32 %v1747_v46, %v1056_v48 }
 0x2de   : > { %v952_v22 = vadd.f32 %v1745_v10, %v951_v19  ;;  %1586 = vmatmul.msk.bf16.vlgmr.msrb.gmra.mxu2 %vm868_vm3, %v894_v21  ;;  %v1679_v19 = vld [vmem:[%s1971_s17 + $0x8] sm:$0xff]  ;;  %v1734_v21 = vld [vmem:[%s2189_s8] ss:$0 sm:$0xff] }
 0x2df   : > { %v1058_v50 = vadd.f32 %v1747_v46, %v1057_v49  ;;  %1221 = vmatpush.bf16.msrb.mxu3 %v1683_v15 }
 0x2e0   : > { %v956_v24 = vsel %vm955_vm11, %v1745_v10, %v952_v22 }
 0x2e1   : > { %v961_v25 = vsel %vm958_vm12, %v960_v23, %v956_v24  ;;  %v2059_v51 = vsel %vm1059_vm14, %v1747_v46, %v1058_v50 }
 0x2e2   : > { %v962_v26 = vmul.f32 %v1741_v61, %v961_v25 }
 0x2e3   : > { %1222 = vmatpush.bf16.msrb.mxu3 %v1682_v16 }
 0x2e4   : > { %1588 = vst.msk [vmem:[%s1995_s22 + $0x8] sm:$0xff] %vm868_vm3, %v962_v26  ;;  %v965_v27 = vpack.c.bf16 %v962_v26, %v962_v26 }
 0x2e7   : > { %1223 = vmatpush.bf16.msrb.mxu3 %v1681_v17 }
 0x2eb   : > { %1224 = vmatpush.bf16.msrb.mxu3 %v1680_v18 }
 0x2ee   : > { %1589 = vmatmul.msk.bf16.vlgmr.msra.gmra.mxu2 %vm868_vm3, %v965_v27 }
 0x2ef   : > { %1225 = vmatpush.bf16.msrb.mxu3 %v1679_v19 }
 0x2f3   : > { %1226 = vmatpush.bf16.msrb.mxu3 %v1678_v20 }
 0x361   : > { %v911_v30 = vpop.f32.mrf.mxu2 }
 0x362   : > { %915 = vst.msk [vmem:[#allocation3] sm:$0xff] %vm848_vm2, %v911_v30 }
 0x369   : > { %v913_v31 = vpop.f32.mrf.mxu2 }
 0x371   : > { %v984_v32 = vpop.f32.mrf.mxu2 }
 0x372   : > { %989 = vrot.lane.b32.xlu2 %v984_v32, %s1796_s18 }
 0x379   : > { %v986_v33 = vpop.f32.mrf.mxu2 }
 0x3cc   : > { %v990_v36 = vpop.permute.xlu2 %989 }
 0x3cd   : > { %993 = vst.msk [vmem:[#allocation3] sm:$0xff] %vm992_vm13, %v990_v36 }
 0x3d4   : > { %v994_v37 = vld [vmem:[#allocation3] sm:$0xff] }
 0x3d5   : > { %v995_v38 = vpack.c.bf16 %v994_v37, %v994_v37 }
 0x3d7   : > { %1606 = vmatmul.msk.bf16.vlgmr.msrb.gmra.mxu0 %vm810_vm1, %v995_v38 }
 0x454   : > { %v1044_v40 = vpop.f32.mrf.mxu0 }
 0x455   : > { %v1045_v41 = vadd.f32 %v1731_v39, %v1044_v40 }
 0x457   : > { %v1048_v42 = vadd.f32 %v1045_v41, %v2006_v13 }
 0x459   : > { %v1051_v43 = vsel %vm810_vm1, %v1048_v42, 0.0 }
 0x45a   : > { %1052 = vadd.xlane.f32.xlu2 %v1051_v43 }
 0x45c   : > { %v1046_v44 = vpop.f32.mrf.mxu0 }
 0x4cd   : > { %v1053_v13 = vpop.xlane.xlu2 %1052 }
 0x4ce   : > { %v1061_v52 = vmul.f32 %v2059_v51, %v1053_v13 }
 0x4d0   : > { %v1062_v53 = vsub.f32 %v1048_v42, %v1061_v52 }
 0x4d2   : > { %v1063_v54 = vmul.f32 %v1062_v53, %v1062_v53 }
 0x4d4   : > { %v1064_v55 = vsel %vm810_vm1, %v1063_v54, 0.0 }
 0x4d5   : > { %1065 = vadd.xlane.f32.xlu1 %v1064_v55  ;;  %v1736_v55 = vld [vmem:[%s2191_s24] ss:$0 sm:$0xff] }
 0x548   : > { %v1066_v61 = vpop.xlane.xlu1 %1065 }
 0x549   : > { %v1067_v62 = vmul.f32 %v1066_v61, %v2059_v51 }
 0x54b   : > { %v1068_v63 = vadd.f32 1e-05, %v1067_v62 }
 0x54d   : > { %1748 = vrsqrt.f32 %v1068_v63  ;;  %vm1075_vm0 = vweird.f32 %v1068_v63 }
 0x553   : > { %v1749_v0 = vpop.eup %1748 }
 0x554   : > { %v1070_v1 = vmul.f32 %v1749_v0, %v1068_v63  ;;  %vm1076_vm15 = vweird.f32 %v1749_v0 }
 0x555   : > { %vm1077_vm2 = vmor %vm1075_vm0, %vm1076_vm15 }
 0x556   : > { %v1071_v2 = vmul.f32 %v1749_v0, %v1070_v1 }
 0x558   : > { %v1072_v3 = vmul.f32 0.5, %v1071_v2 }
 0x55a   : > { %v1073_v4 = vsub.f32 1.5, %v1072_v3 }
 0x55c   : > { %v1074_v5 = vmul.f32 %v1749_v0, %v1073_v4 }
 0x55e   : > { %v1078_v7 = vsel %vm1077_vm2, %v1749_v0, %v1074_v5 }
 0x55f   : > { %v1079_v8 = vmul.f32 %v1078_v7, %v1062_v53 }
 0x561   : > { %v1083_v10 = vmul.f32 %v1732_v6, %v1079_v8 }
 0x563   : > { %v1087_v11 = vadd.f32 %v1733_v9, %v1083_v10 }
 0x565   : > { %v1088_v12 = vpack.c.bf16 %v1087_v11, %v1087_v11 }
 0x567   : > { %1623 = vmatmul.msk.bf16.vlgmr.msrb.gmra.mxu1 %vm810_vm1, %v1088_v12 }
 0x5e4   : > { %v1137_v22 = vpop.f32.mrf.mxu1 }
 0x5e5   : > { %v1138_v23 = vadd.f32 %v1734_v21, %v1137_v22 }
 0x5e7   : > { %v1141_v24 = vmul.f32 %v1138_v23, %v1138_v23 }
 0x5e9   : > { %v1142_v25 = vmul.f32 %v1141_v24, %v1138_v23 }
 0x5eb   : > { %v1143_v26 = vmul.f32 0.044715, %v1142_v25 }
 0x5ec   : > { %v1139_v27 = vpop.f32.mrf.mxu1 }
 0x5ed   : > { %v1144_v28 = vadd.f32 %v1143_v26, %v1138_v23 }
 0x5ef   : > { %v1145_v29 = vmul.f32 0.7978846, %v1144_v28 }
 0x5f1   : > { %1750 = vtanh.f32 %v1145_v29 }
 0x5f7   : > { %v1751_v30 = vpop.eup %1750 }
 0x5f8   : > { %v1147_v31 = vadd.f32 1.0, %v1751_v30 }
 0x5fa   : > { %v1148_v32 = vmul.f32 0.5, %v1147_v31 }
 0x5fc   : > { %v1149_v33 = vmul.f32 %v1148_v32, %v1138_v23 }
 0x5fe   : > { %v1150_v34 = vpack.c.bf16 %v1149_v33, %v1149_v33 }
 0x600   : > { %1227 = vmatmul.bf16.vlgmr.msrb.gmra.mxu3 %v1150_v34 }
 0x683   : > { %v1228_v36 = vpop.f32.mrf.mxu3 }
 0x684   : > { %v1229_v37 = vadd.f32 %v1735_v35, %v1228_v36 }
 0x686   : > { %v1232_v38 = vadd.f32 %v1229_v37, %v1087_v11 }
 0x688   : > { %v1235_v39 = vsel %vm810_vm1, %v1232_v38, 0.0 }
 0x689   : > { %1236 = vadd.xlane.f32.xlu0 %v1235_v39 }
 0x68b   : > { %v1230_v40 = vpop.f32.mrf.mxu3 }
 0x6fc   : > { %v1237_v41 = vpop.xlane.xlu0 %1236 }
 0x6fd   : > { %v1238_v42 = vmul.f32 %v1237_v41, %v2059_v51 }
 0x6ff   : > { %v1239_v43 = vsub.f32 %v1232_v38, %v1238_v42 }
 0x701   : > { %v1240_v44 = vmul.f32 %v1239_v43, %v1239_v43 }
 0x703   : > { %v1241_v45 = vsel %vm810_vm1, %v1240_v44, 0.0 }
 0x704   : > { %1242 = vadd.xlane.f32.xlu1 %v1241_v45 }
 0x777   : > { %v1243_v46 = vpop.xlane.xlu1 %1242 }
 0x778   : > { %v1244_v47 = vmul.f32 %v1243_v46, %v2059_v51  ;;  %v1737_v51 = vld [vmem:[%s726_s0] ss:$0 sm:$0xff] }
 0x77a   : > { %v1245_v48 = vadd.f32 1e-05, %v1244_v47 }
 0x77c   : > { %1752 = vrsqrt.f32 %v1245_v48  ;;  %vm1252_vm4 = vweird.f32 %v1245_v48 }
 0x782   : > { %v1753_v49 = vpop.eup %1752 }
 0x783   : > { %v1247_v50 = vmul.f32 %v1753_v49, %v1245_v48  ;;  %vm1253_vm3 = vweird.f32 %v1753_v49 }
 0x784   : > { %vm1254_vm5 = vmor %vm1252_vm4, %vm1253_vm3 }
 0x785   : > { %v1248_v13 = vmul.f32 %v1753_v49, %v1247_v50 }
 0x787   : > { %v1249_v52 = vmul.f32 0.5, %v1248_v13 }
 0x789   : > { %v1250_v53 = vsub.f32 1.5, %v1249_v52 }
 0x78b   : > { %v1251_v54 = vmul.f32 %v1753_v49, %v1250_v53 }
 0x78d   : > { %v1255_v56 = vsel %vm1254_vm5, %v1753_v49, %v1251_v54 }
 0x78e   : > { %v1256_v57 = vmul.f32 %v1255_v56, %v1239_v43 }
 0x790   : > { %v1260_v58 = vmul.f32 %v1736_v55, %v1256_v57 }
 0x792   : > { %v1264_v59 = vadd.f32 %v1737_v51, %v1260_v58 }
 0x794   : > { %1265 = vst.msk [vmem:[#allocation2] sm:$0xff] %vm810_vm1, %v1264_v59 }
 0x795   : > { %1266 = vst.msk [vmem:[%s1989_s23] sm:$0xff] %vm810_vm1, %v1264_v59 }
 0x796 PF: > { %s2193_s19 = sld [smem:[#allocation7_spill]] }
 0x797   : > { %s2194_s18 = sld [smem:[#allocation5_spill]] }
 0x798   : > { %s2196_s20 = sld [smem:[#allocation8_spill]] }
 0x799   : > { %s2197_s21 = sld [smem:[#allocation9_spill]] }
 0x79c   : > { %s26_s22 = sadd.s32 1, %s2193_s19   ;;  %s2195_s19 = sld [smem:[#allocation6_spill]] }
 0x79d   : > { %p23_p9 = scmp.ge.s32.totalorder %s26_s22, 6  }
 0x79f   :  { %25 = sbr.rel (!%p23_p9) target bundleno = 11 (0xb), region = 162 }

</bundles_post_ra>
